<compile_context>
chip_gen: v7x
topology: tpu7x:2x2x1
jax: 0.10.0
libtpu: 0.0.40
codegen_flags: <defaults>
</compile_context>

<pallas_src>
import functools
import math

import jax
import jax.numpy as jnp
from jax.experimental import pallas as pl
from jax.experimental.pallas import tpu as pltpu

LN_EPS = 1e-5
_INV_SQRT2 = 1.0 / math.sqrt(2.0)


def _round_up(a, m):
    return ((a + m - 1) // m) * m


def _vmem_budgets():
    """Generation-aware (pipeline_budget, vmem_limit) in bytes."""
    try:
        cap = int(pltpu.get_tpu_info().vmem_capacity_bytes)
    except Exception:
        cap = 64 * 1024 * 1024  # conservative fallback: v7x per-TC VMEM
    pipeline_budget = min(cap // 3, 40 * 1024 * 1024)   # ~40 MiB v5e/v6e, ~21 MiB v7x
    vmem_limit = min((cap * 3) // 4, 96 * 1024 * 1024)  # explicit scoped limit
    return pipeline_budget, vmem_limit


def _pick_tiles(S, D, budget, max_tile=2048):
    """Per-pass seq tiles (t1 for LN/context, t3 for apply) and padded S.

    Apply pass double-buffers in+out (~4 * t3 * D * 4 bytes live); LN pass
    double-buffers only the input but holds the gate-MLP weights resident.
    t1 is an integer multiple of t3 so one padded length serves both grids."""
    elt = 4  # f32
    weight_bytes = 2 * (2 * D * D + 4 * D) * elt  # double-buffered resident params

    cap3 = (budget // (4 * D * elt)) // 8 * 8
    cap3 = max(8, min(cap3, max_tile))
    cap1 = (max(0, budget - weight_bytes) // (2 * D * elt)) // 8 * 8
    cap1 = max(8, min(cap1, max_tile))

    S8 = _round_up(S, 8)
    if cap3 >= S8:
        t3 = S8
        n3 = 1
    else:
        n3 = -(-S8 // cap3)
        t3 = _round_up(-(-S8 // n3), 8)
        n3 = -(-S8 // t3)
    Sp = n3 * t3

    # Largest multiple of t3 that divides Sp and fits the Pass-1 budget.
    m = 1
    for cand in range(1, n3 + 1):
        if n3 % cand == 0 and cand * t3 <= cap1:
            m = cand
    t1 = m * t3
    return t1, t3, Sp


# ---------------------------------------------------------------------------
# Pass 1: LayerNorm -> running sum over seq -> (at finalize) mean, gate MLP.
# Grid: (B, Sp // t1); seq axis is the reduction ("arbitrary", last).
# ---------------------------------------------------------------------------
def _ln_ctx_gate_kernel(x_ref, gamma_ref, beta_ref, w1_ref, b1_ref, w2_ref,
                        b2_ref, gate_ref, acc_ref, *,
                        true_seq_len, tile_rows, needs_mask):
    s_idx = pl.program_id(1)

    @pl.when(s_idx == 0)
    def _init():
        acc_ref[...] = jnp.zeros_like(acc_ref)

    x = x_ref[...]                                       # (t1, D), batch squeezed
    mu = jnp.mean(x, axis=-1, keepdims=True)             # (t1, 1)
    xc = x - mu
    var = jnp.mean(xc * xc, axis=-1, keepdims=True)      # biased var (nn.LayerNorm)
    norm = xc * jax.lax.rsqrt(var + LN_EPS)
    norm = norm * gamma_ref[...] + beta_ref[...]         # (1, D) broadcast

    if needs_mask:
        row = (jax.lax.broadcasted_iota(jnp.int32, (tile_rows, 1), 0)
               + s_idx * tile_rows)
        norm = jnp.where(row < true_seq_len, norm, 0.0)  # zero padded rows

    # Partial sums into 8 sublanes; collapse to (1, D) only at finalize.
    acc_ref[...] += jnp.sum(
        norm.reshape(tile_rows // 8, 8, norm.shape[-1]), axis=0)

    @pl.when(s_idx == pl.num_programs(1) - 1)
    def _finalize():
        # Mean over the TRUE sequence length, then the gate MLP (weights are
        # resident — loaded once for the whole grid).
        ctx = jnp.sum(acc_ref[...], axis=0, keepdims=True) * (1.0 / true_seq_len)
        h = jnp.dot(ctx, w1_ref[...],
                    preferred_element_type=jnp.float32) + b1_ref[...]
        h = 0.5 * h * (1.0 + jax.lax.erf(h * _INV_SQRT2))   # exact GELU
        g = jnp.dot(h, w2_ref[...],
                    preferred_element_type=jnp.float32) + b2_ref[...]
        gate_ref[...] = jax.nn.sigmoid(g)                    # (1, D)


# ---------------------------------------------------------------------------
# Pass 2: gated_x = x * gate, streaming lane-dense elementwise pass.
# Grid: (B, Sp // t3); both axes "parallel".
# ---------------------------------------------------------------------------
def _apply_gate_kernel(x_ref, gate_ref, o_ref):
    o_ref[...] = x_ref[...] * gate_ref[...]              # (t3, D) * (1, D)


@functools.partial(jax.jit, static_argnames=("seq_tiles",))
def spectral_gating(x, gamma, beta, w1, b1, w2, b2, *, seq_tiles=None):
    """x: [B, S, D] f32; returns the gated tensor of the same shape."""
    B, S, D = x.shape
    budget, vmem_limit = _vmem_budgets()

    if seq_tiles is not None:
        t1, t3 = seq_tiles
        assert t1 % 8 == 0 and t3 % 8 == 0, "seq tiles must be multiples of 8"
        lcm = t1 * t3 // math.gcd(t1, t3)
        Sp = _round_up(S, lcm)
    else:
        t1, t3, Sp = _pick_tiles(S, D, budget)

    n1 = Sp // t1
    n3 = Sp // t3
    needs_pad = Sp != S
    xp = jnp.pad(x, ((0, 0), (0, Sp - S), (0, 0))) if needs_pad else x

    param_spec = pl.BlockSpec((1, D), lambda b, s: (0, 0))
    weight_spec = pl.BlockSpec((D, D), lambda b, s: (0, 0))
    elt = 4

    # ---- Pass 1: per-batch gate vector (B, 1, D), context fused in ----
    ln_cost = pl.CostEstimate(
        flops=int(8 * B * Sp * D + 4 * B * D * D),
        transcendentals=int(B * Sp + 2 * B * D),
        bytes_accessed=int(B * Sp * D * elt + (2 * D * D + 5 * D) * elt
                           + B * D * elt),
    )
    gate = pl.pallas_call(
        functools.partial(_ln_ctx_gate_kernel,
                          true_seq_len=S, tile_rows=t1, needs_mask=needs_pad),
        out_shape=jax.ShapeDtypeStruct((B, 1, D), jnp.float32),
        grid_spec=pltpu.PrefetchScalarGridSpec(
            num_scalar_prefetch=0,
            grid=(B, n1),
            in_specs=[
                pl.BlockSpec((None, t1, D), lambda b, s: (b, s, 0)),  # x chunk
                param_spec,    # gamma
                param_spec,    # beta
                weight_spec,   # w1
                param_spec,    # b1
                weight_spec,   # w2
                param_spec,    # b2
            ],
            out_specs=pl.BlockSpec((None, 1, D), lambda b, s: (b, 0, 0)),
            scratch_shapes=[pltpu.VMEM((8, D), jnp.float32)],
        ),
        compiler_params=pltpu.CompilerParams(
            dimension_semantics=("parallel", "arbitrary"),
            vmem_limit_bytes=vmem_limit),
        cost_estimate=ln_cost,
    )(xp, gamma, beta, w1, b1, w2, b2)

    # ---- Pass 2: apply gate, fully parallel streaming pass ----
    # TODO(synk): add input_output_aliases={0: 0} when the caller donates x.
    apply_cost = pl.CostEstimate(
        flops=int(B * Sp * D),
        transcendentals=0,
        bytes_accessed=int(2 * B * Sp * D * elt + B * D * elt),
    )
    out = pl.pallas_call(
        _apply_gate_kernel,
        out_shape=jax.ShapeDtypeStruct((B, Sp, D), x.dtype),
        grid_spec=pltpu.PrefetchScalarGridSpec(
            num_scalar_prefetch=0,
            grid=(B, n3),
            in_specs=[
                pl.BlockSpec((None, t3, D), lambda b, s: (b, s, 0)),  # x chunk
                pl.BlockSpec((None, 1, D), lambda b, s: (b, 0, 0)),   # gate
            ],
            out_specs=pl.BlockSpec((None, t3, D), lambda b, s: (b, s, 0)),
        ),
        compiler_params=pltpu.CompilerParams(
            dimension_semantics=("parallel", "parallel"),
            vmem_limit_bytes=vmem_limit),
        cost_estimate=apply_cost,
    )(xp, gate)

    return out[:, :S, :] if needs_pad else out


def spectral_gating_ref(x, gamma, beta, w1, b1, w2, b2):
    """Pure-JAX reference for correctness check."""
    mu = jnp.mean(x, axis=-1, keepdims=True)
    var = jnp.mean((x - mu) ** 2, axis=-1, keepdims=True)
    norm = (x - mu) / jnp.sqrt(var + LN_EPS) * gamma + beta
    context = jnp.mean(norm, axis=1, keepdims=True)           # (B, 1, D)
    h = context @ w1 + b1
    h = 0.5 * h * (1.0 + jax.lax.erf(h * _INV_SQRT2))
    gate = jax.nn.sigmoid(h @ w2 + b2)
    return x * gate


def _make_inputs(key, B, S, D):
    kx, k1, k2, k3, k4 = jax.random.split(key, 5)
    x = jax.random.normal(kx, (B, S, D), dtype=jnp.float32)
    gamma = jnp.ones((1, D), jnp.float32)      # torch LayerNorm default init
    beta = jnp.zeros((1, D), jnp.float32)
    bound = 1.0 / math.sqrt(D)                 # torch Linear default init range
    w1 = jax.random.uniform(k1, (D, D), jnp.float32, -bound, bound)  # [in, out]
    b1 = jax.random.uniform(k2, (1, D), jnp.float32, -bound, bound)
    w2 = jax.random.uniform(k3, (D, D), jnp.float32, -bound, bound)
    b2 = jax.random.uniform(k4, (1, D), jnp.float32, -bound, bound)
    return x, gamma, beta, w1, b1, w2, b2


if __name__ == "__main__":
    key = jax.random.PRNGKey(0)
    k_a, k_b, k_c = jax.random.split(key, 3)

    # Test 1: module-consistent small shape (single tile for both passes).
    args = _make_inputs(k_a, B=2, S=8, D=32)
    out = jax.block_until_ready(spectral_gating(*args))
    ref = spectral_gating_ref(*args)
    assert out.shape == (2, 8, 32)
    assert jnp.allclose(out, ref, atol=1e-4, rtol=1e-4), "mismatch (test 1)"

    # Test 2: chunked accumulation with distinct per-pass tiles, lane-dense D.
    args2 = _make_inputs(k_b, B=2, S=64, D=128)
    out2 = jax.block_until_ready(spectral_gating(*args2, seq_tiles=(32, 16)))
    ref2 = spectral_gating_ref(*args2)
    assert out2.shape == (2, 64, 128)
    assert jnp.allclose(out2, ref2, atol=1e-4, rtol=1e-4), "mismatch (test 2)"

    # Test 3: S not a multiple of 8 -> wrapper padding + in-kernel row mask.
    args3 = _make_inputs(k_c, B=2, S=13, D=32)
    out3 = jax.block_until_ready(spectral_gating(*args3))
    ref3 = spectral_gating_ref(*args3)
    assert out3.shape == (2, 13, 32)
    assert jnp.allclose(out3, ref3, atol=1e-4, rtol=1e-4), "mismatch (test 3)"

    print("KERNEL_OK")
</pallas_src>

<mosaic_0001>
module attributes {stable_mosaic.version = 11 : i64} {
  func.func @_apply_gate_kernel(%arg0: i32, %arg1: i32, %arg2: memref<1x8x32xf32, #tpu.memory_space<vmem>>, %arg3: memref<1x1x32xf32, #tpu.memory_space<vmem>>, %arg4: memref<1x8x32xf32, #tpu.memory_space<vmem>>) attributes {dimension_semantics = [#tpu.dimension_semantics<parallel>, #tpu.dimension_semantics<parallel>], iteration_bounds = array<i64: 2, 1>, scalar_prefetch = 0 : i64, scratch_operands = 0 : i64, tpu.core_type = #tpu.core_type<tc>, window_params = [{transform_indices = @transform_0, window_bounds = array<i64: 1, 8, 32>}, {transform_indices = @transform_1, window_bounds = array<i64: 1, 1, 32>}, {transform_indices = @transform_2, window_bounds = array<i64: 1, 8, 32>}]} {
    %c0 = arith.constant 0 : index
    %c0_0 = arith.constant 0 : index
    %c0_1 = arith.constant 0 : index
    %0 = vector.load %arg2[%c0, %c0_0, %c0_1] : memref<1x8x32xf32, #tpu.memory_space<vmem>>, vector<1x8x32xf32>
    %1 = vector.shape_cast %0 : vector<1x8x32xf32> to vector<8x32xf32>
    %c0_2 = arith.constant 0 : index
    %c0_3 = arith.constant 0 : index
    %c0_4 = arith.constant 0 : index
    %2 = vector.load %arg3[%c0_2, %c0_3, %c0_4] : memref<1x1x32xf32, #tpu.memory_space<vmem>>, vector<1x1x32xf32>
    %3 = vector.shape_cast %2 : vector<1x1x32xf32> to vector<1x32xf32>
    %4 = vector.broadcast %3 : vector<1x32xf32> to vector<8x32xf32>
    %5 = arith.mulf %1, %4 : vector<8x32xf32>
    %c0_5 = arith.constant 0 : index
    %c0_6 = arith.constant 0 : index
    %c0_7 = arith.constant 0 : index
    %6 = vector.load %arg4[%c0_5, %c0_6, %c0_7] : memref<1x8x32xf32, #tpu.memory_space<vmem>>, vector<1x8x32xf32>
    %7 = vector.shape_cast %6 : vector<1x8x32xf32> to vector<8x32xf32>
    %8 = vector.shape_cast %5 : vector<8x32xf32> to vector<1x8x32xf32>
    tpu.vector_store %arg4[%c0_5, %c0_6, %c0_7], %8 {strides = array<i32>} : memref<1x8x32xf32, #tpu.memory_space<vmem>>, vector<1x8x32xf32>,
    return
  }
  func.func @transform_0(%arg0: i32, %arg1: i32) -> (i32, i32, i32) {
    %c0_i32 = arith.constant 0 : i32
    %c0_i32_0 = arith.constant 0 : i32
    return %arg0, %arg1, %c0_i32 : i32, i32, i32
  }
  func.func @transform_1(%arg0: i32, %arg1: i32) -> (i32, i32, i32) {
    %c0_i32 = arith.constant 0 : i32
    %c0_i32_0 = arith.constant 0 : i32
    %c0_i32_1 = arith.constant 0 : i32
    return %arg0, %c0_i32, %c0_i32_0 : i32, i32, i32
  }
  func.func @transform_2(%arg0: i32, %arg1: i32) -> (i32, i32, i32) {
    %c0_i32 = arith.constant 0 : i32
    %c0_i32_0 = arith.constant 0 : i32
    return %arg0, %arg1, %c0_i32 : i32, i32, i32
  }
}

module attributes {stable_mosaic.version = 11 : i64} {
  func.func @_ln_ctx_gate_kernel(%arg0: i32, %arg1: i32, %arg2: memref<1x8x32xf32, #tpu.memory_space<vmem>>, %arg3: memref<1x32xf32, #tpu.memory_space<vmem>>, %arg4: memref<1x32xf32, #tpu.memory_space<vmem>>, %arg5: memref<32x32xf32, #tpu.memory_space<vmem>>, %arg6: memref<1x32xf32, #tpu.memory_space<vmem>>, %arg7: memref<32x32xf32, #tpu.memory_space<vmem>>, %arg8: memref<1x32xf32, #tpu.memory_space<vmem>>, %arg9: memref<1x1x32xf32, #tpu.memory_space<vmem>>, %arg10: memref<8x32xf32, #tpu.memory_space<vmem>>) attributes {dimension_semantics = [#tpu.dimension_semantics<parallel>, #tpu.dimension_semantics<arbitrary>], iteration_bounds = array<i64: 2, 1>, scalar_prefetch = 0 : i64, scratch_operands = 1 : i64, tpu.core_type = #tpu.core_type<tc>, window_params = [{transform_indices = @transform_0, window_bounds = array<i64: 1, 8, 32>}, {pipeline_mode = #tpu.pipeline_mode<synchronous>, transform_indices = @transform_1, window_bounds = array<i64: 1, 32>}, {pipeline_mode = #tpu.pipeline_mode<synchronous>, transform_indices = @transform_2, window_bounds = array<i64: 1, 32>}, {pipeline_mode = #tpu.pipeline_mode<synchronous>, transform_indices = @transform_3, window_bounds = array<i64: 32, 32>}, {pipeline_mode = #tpu.pipeline_mode<synchronous>, transform_indices = @transform_4, window_bounds = array<i64: 1, 32>}, {pipeline_mode = #tpu.pipeline_mode<synchronous>, transform_indices = @transform_5, window_bounds = array<i64: 32, 32>}, {pipeline_mode = #tpu.pipeline_mode<synchronous>, transform_indices = @transform_6, window_bounds = array<i64: 1, 32>}, {transform_indices = @transform_7, window_bounds = array<i64: 1, 1, 32>}]} {
    %c0_i32 = arith.constant 0 : i32
    %0 = arith.cmpi eq, %arg1, %c0_i32 : i32
    %1 = arith.extui %0 : i1 to i32
    %c0_i32_0 = arith.constant 0 : i32
    %2 = arith.cmpi ne, %1, %c0_i32_0 : i32
    scf.if %2 {
      %cst_18 = arith.constant 0.000000e+00 : f32
      %35 = vector.broadcast %cst_18 : f32 to vector<8x32xf32>
      %c0_19 = arith.constant 0 : index
      %c0_20 = arith.constant 0 : index
      %36 = vector.load %arg10[%c0_19, %c0_20] : memref<8x32xf32, #tpu.memory_space<vmem>>, vector<8x32xf32>
      tpu.vector_store %arg10[%c0_19, %c0_20], %35 {strides = array<i32>} : memref<8x32xf32, #tpu.memory_space<vmem>>, vector<8x32xf32>,
    } else {
    }
    %c0 = arith.constant 0 : index
    %c0_1 = arith.constant 0 : index
    %c0_2 = arith.constant 0 : index
    %3 = vector.load %arg2[%c0, %c0_1, %c0_2] : memref<1x8x32xf32, #tpu.memory_space<vmem>>, vector<1x8x32xf32>
    %4 = vector.shape_cast %3 : vector<1x8x32xf32> to vector<8x32xf32>
    %cst = arith.constant dense<0.000000e+00> : vector<8xf32>
    %5 = vector.multi_reduction <add>, %4, %cst [1] : vector<8x32xf32> to vector<8xf32>
    %6 = vector.shape_cast %5 : vector<8xf32> to vector<8x1xf32>
    %cst_3 = arith.constant 3.200000e+01 : f32
    %7 = vector.broadcast %cst_3 : f32 to vector<8x1xf32>
    %8 = arith.divf %6, %7 : vector<8x1xf32>
    %9 = vector.broadcast %8 : vector<8x1xf32> to vector<8x32xf32>
    %10 = arith.subf %4, %9 : vector<8x32xf32>
    %11 = arith.mulf %10, %10 : vector<8x32xf32>
    %cst_4 = arith.constant dense<0.000000e+00> : vector<8xf32>
    %12 = vector.multi_reduction <add>, %11, %cst_4 [1] : vector<8x32xf32> to vector<8xf32>
    %13 = vector.shape_cast %12 : vector<8xf32> to vector<8x1xf32>
    %cst_5 = arith.constant 3.200000e+01 : f32
    %14 = vector.broadcast %cst_5 : f32 to vector<8x1xf32>
    %15 = arith.divf %13, %14 : vector<8x1xf32>
    %cst_6 = arith.constant 9.99999974E-6 : f32
    %16 = vector.broadcast %cst_6 : f32 to vector<8x1xf32>
    %17 = arith.addf %15, %16 : vector<8x1xf32>
    %18 = math.rsqrt %17 : vector<8x1xf32>
    %19 = vector.broadcast %18 : vector<8x1xf32> to vector<8x32xf32>
    %20 = arith.mulf %10, %19 : vector<8x32xf32>
    %c0_7 = arith.constant 0 : index
    %c0_8 = arith.constant 0 : index
    %21 = vector.load %arg3[%c0_7, %c0_8] : memref<1x32xf32, #tpu.memory_space<vmem>>, vector<1x32xf32>
    %22 = vector.broadcast %21 : vector<1x32xf32> to vector<8x32xf32>
    %23 = arith.mulf %20, %22 : vector<8x32xf32>
    %c0_9 = arith.constant 0 : index
    %c0_10 = arith.constant 0 : index
    %24 = vector.load %arg4[%c0_9, %c0_10] : memref<1x32xf32, #tpu.memory_space<vmem>>, vector<1x32xf32>
    %25 = vector.broadcast %24 : vector<1x32xf32> to vector<8x32xf32>
    %26 = arith.addf %23, %25 : vector<8x32xf32>
    %c0_11 = arith.constant 0 : index
    %c0_12 = arith.constant 0 : index
    %27 = vector.load %arg10[%c0_11, %c0_12] : memref<8x32xf32, #tpu.memory_space<vmem>>, vector<8x32xf32>
    %28 = vector.shape_cast %26 : vector<8x32xf32> to vector<1x8x32xf32>
    %cst_13 = arith.constant dense<0.000000e+00> : vector<8x32xf32>
    %29 = vector.multi_reduction <add>, %28, %cst_13 [0] : vector<1x8x32xf32> to vector<8x32xf32>
    %30 = arith.addf %27, %29 : vector<8x32xf32>
    %c0_14 = arith.constant 0 : index
    %c0_15 = arith.constant 0 : index
    %31 = vector.load %arg10[%c0_14, %c0_15] : memref<8x32xf32, #tpu.memory_space<vmem>>, vector<8x32xf32>
    tpu.vector_store %arg10[%c0_14, %c0_15], %30 {strides = array<i32>} : memref<8x32xf32, #tpu.memory_space<vmem>>, vector<8x32xf32>,
    %c0_i32_16 = arith.constant 0 : i32
    %32 = arith.cmpi eq, %arg1, %c0_i32_16 : i32
    %33 = arith.extui %32 : i1 to i32
    %c0_i32_17 = arith.constant 0 : i32
    %34 = arith.cmpi ne, %33, %c0_i32_17 : i32
    scf.if %34 {
      %c0_18 = arith.constant 0 : index
      %c0_19 = arith.constant 0 : index
      %35 = vector.load %arg10[%c0_18, %c0_19] : memref<8x32xf32, #tpu.memory_space<vmem>>, vector<8x32xf32>
      %cst_20 = arith.constant dense<0.000000e+00> : vector<32xf32>
      %36 = vector.multi_reduction <add>, %35, %cst_20 [0] : vector<8x32xf32> to vector<32xf32>
      %37 = vector.shape_cast %36 : vector<32xf32> to vector<1x32xf32>
      %cst_21 = arith.constant 1.250000e-01 : f32
      %38 = vector.broadcast %cst_21 : f32 to vector<1x32xf32>
      %39 = arith.mulf %37, %38 : vector<1x32xf32>
      %c0_22 = arith.constant 0 : index
      %c0_23 = arith.constant 0 : index
      %40 = vector.load %arg5[%c0_22, %c0_23] : memref<32x32xf32, #tpu.memory_space<vmem>>, vector<32x32xf32>
      %cst_24 = arith.constant dense<0.000000e+00> : vector<1x32xf32>
      %41 = tpu.matmul %39, %40, %cst_24 {dimension_numbers = #tpu.dot_dimension_numbers<[1], [0], [0], [1], [0, 0, 1, 1], [], []>} : vector<1x32xf32>, vector<32x32xf32>, vector<1x32xf32> -> vector<1x32xf32>
      %c0_25 = arith.constant 0 : index
      %c0_26 = arith.constant 0 : index
      %42 = vector.load %arg6[%c0_25, %c0_26] : memref<1x32xf32, #tpu.memory_space<vmem>>, vector<1x32xf32>
      %43 = arith.addf %41, %42 : vector<1x32xf32>
      %cst_27 = arith.constant 5.000000e-01 : f32
      %44 = vector.broadcast %cst_27 : f32 to vector<1x32xf32>
      %45 = arith.mulf %44, %43 : vector<1x32xf32>
      %cst_28 = arith.constant 0.707106769 : f32
      %46 = vector.broadcast %cst_28 : f32 to vector<1x32xf32>
      %47 = arith.mulf %43, %46 : vector<1x32xf32>
      %48 = math.erf %47 : vector<1x32xf32>
      %cst_29 = arith.constant 1.000000e+00 : f32
      %49 = vector.broadcast %cst_29 : f32 to vector<1x32xf32>
      %50 = arith.addf %49, %48 : vector<1x32xf32>
      %51 = arith.mulf %45, %50 : vector<1x32xf32>
      %c0_30 = arith.constant 0 : index
      %c0_31 = arith.constant 0 : index
      %52 = vector.load %arg7[%c0_30, %c0_31] : memref<32x32xf32, #tpu.memory_space<vmem>>, vector<32x32xf32>
      %cst_32 = arith.constant dense<0.000000e+00> : vector<1x32xf32>
      %53 = tpu.matmul %51, %52, %cst_32 {dimension_numbers = #tpu.dot_dimension_numbers<[1], [0], [0], [1], [0, 0, 1, 1], [], []>} : vector<1x32xf32>, vector<32x32xf32>, vector<1x32xf32> -> vector<1x32xf32>
      %c0_33 = arith.constant 0 : index
      %c0_34 = arith.constant 0 : index
      %54 = vector.load %arg8[%c0_33, %c0_34] : memref<1x32xf32, #tpu.memory_space<vmem>>, vector<1x32xf32>
      %55 = arith.addf %53, %54 : vector<1x32xf32>
      %56 = arith.negf %55 : vector<1x32xf32>
      %57 = math.exp %56 : vector<1x32xf32>
      %cst_35 = arith.constant 1.000000e+00 : f32
      %58 = vector.broadcast %cst_35 : f32 to vector<1x32xf32>
      %59 = arith.addf %58, %57 : vector<1x32xf32>
      %60 = arith.divf %58, %59 : vector<1x32xf32>
      %c0_36 = arith.constant 0 : index
      %c0_37 = arith.constant 0 : index
      %c0_38 = arith.constant 0 : index
      %61 = vector.load %arg9[%c0_36, %c0_37, %c0_38] : memref<1x1x32xf32, #tpu.memory_space<vmem>>, vector<1x1x32xf32>
      %62 = vector.shape_cast %61 : vector<1x1x32xf32> to vector<1x32xf32>
      %63 = vector.shape_cast %60 : vector<1x32xf32> to vector<1x1x32xf32>
      tpu.vector_store %arg9[%c0_36, %c0_37, %c0_38], %63 {strides = array<i32>} : memref<1x1x32xf32, #tpu.memory_space<vmem>>, vector<1x1x32xf32>,
    } else {
    }
    return
  }
  func.func @transform_0(%arg0: i32, %arg1: i32) -> (i32, i32, i32) {
    %c0_i32 = arith.constant 0 : i32
    %c0_i32_0 = arith.constant 0 : i32
    return %arg0, %arg1, %c0_i32 : i32, i32, i32
  }
  func.func @transform_1(%arg0: i32, %arg1: i32) -> (i32, i32) {
    %c0_i32 = arith.constant 0 : i32
    %c0_i32_0 = arith.constant 0 : i32
    %c0_i32_1 = arith.constant 0 : i32
    return %c0_i32, %c0_i32_0 : i32, i32
  }
  func.func @transform_2(%arg0: i32, %arg1: i32) -> (i32, i32) {
    %c0_i32 = arith.constant 0 : i32
    %c0_i32_0 = arith.constant 0 : i32
    %c0_i32_1 = arith.constant 0 : i32
    return %c0_i32, %c0_i32_0 : i32, i32
  }
  func.func @transform_3(%arg0: i32, %arg1: i32) -> (i32, i32) {
    %c0_i32 = arith.constant 0 : i32
    %c0_i32_0 = arith.constant 0 : i32
    %c0_i32_1 = arith.constant 0 : i32
    return %c0_i32, %c0_i32_0 : i32, i32
  }
  func.func @transform_4(%arg0: i32, %arg1: i32) -> (i32, i32) {
    %c0_i32 = arith.constant 0 : i32
    %c0_i32_0 = arith.constant 0 : i32
    %c0_i32_1 = arith.constant 0 : i32
    return %c0_i32, %c0_i32_0 : i32, i32
  }
  func.func @transform_5(%arg0: i32, %arg1: i32) -> (i32, i32) {
    %c0_i32 = arith.constant 0 : i32
    %c0_i32_0 = arith.constant 0 : i32
    %c0_i32_1 = arith.constant 0 : i32
    return %c0_i32, %c0_i32_0 : i32, i32
  }
  func.func @transform_6(%arg0: i32, %arg1: i32) -> (i32, i32) {
    %c0_i32 = arith.constant 0 : i32
    %c0_i32_0 = arith.constant 0 : i32
    %c0_i32_1 = arith.constant 0 : i32
    return %c0_i32, %c0_i32_0 : i32, i32
  }
  func.func @transform_7(%arg0: i32, %arg1: i32) -> (i32, i32, i32) {
    %c0_i32 = arith.constant 0 : i32
    %c0_i32_0 = arith.constant 0 : i32
    %c0_i32_1 = arith.constant 0 : i32
    return %arg0, %c0_i32, %c0_i32_0 : i32, i32, i32
  }
}

</mosaic_0001>

<bundles_post_ra>
// kernel: spectral_gating.3
= control target key start
LH: loop header
LB: loop body
LE: loop exit
PB: predicated region body
PF: predicated region fallthrough
CT: control target
= control target key end

     0   :  { %7 = vsyncpa [#allocation3], 0  ;;  %s562_s0 = inlined_call_operand.vmem [shape: f32[2,8,32], index: 0, kind: input, shape index: {}]   ;;  %s563_s1 = inlined_call_operand.vmem [shape: f32[2,1,32], index: 1, kind: input, shape index: {}]   ;;  %s564_s2 = inlined_call_operand.hbm [shape: f32[2,8,32], index: 2, kind: output, shape index: {}]  }
   0x1   :  { %9 = vsyncpa [#allocation3 + $0x1], 0  ;;  %s447_s9 = smov 0   ;;  %s449_s10 = smov 0  }
   0x2   :  { %s451_s11 = smov 0   ;;  %s453_s12 = smov 0  }
   0x3   :  { %s455_s13 = smov 0   ;;  %s457_s14 = smov 0  }
   0x4 LB: > { %s284_s15 = sadd.s32 4294967295, %s429_s14   ;;  %s285_s16 = sadd.s32 4294967294, %s429_s14   ;;  %s429_s14 = sphi %s457_s14, %s15_s14   ;;  %s425_s13 = sphi %s455_s13, %s571_s13   ;;  %s421_s12 = sphi %s453_s12, %s570_s12   ;;  %s417_s11 = sphi %s451_s11, %s569_s11   ;;  %s413_s10 = sphi %s449_s10, %s568_s10   ;;  %s409_s9 = sphi %s447_s9, %s567_s9  }
   0x5   : > { %s27_s17 = sadd.s32 1, %s425_s13  ;;  %s90_s18 = sadd.s32 1, %s417_s11 }
   0x6   : > { %p29_p0 = scmp.ge.s32.totalorder %s27_s17, 2  ;;  %p100_p1 = scmp.ne.s32.totalorder %s417_s11, %s413_s10 }
   0x7   : > { %p101_p2 = scmp.eq.s32.totalorder %s284_s15, 1  ;;  %p106_p3 = scmp.ne.s32.totalorder %s413_s10, %s409_s9 }
   0x8   : > { %s573_s17 = smov (%p29_p0, %s27_s17), 0  ;;  %p107_p5 = scmp.eq.s32.totalorder %s285_s16, 1 }
   0x9   : > { %p487_p4 = por %p101_p2, %p100_p1  ;;  %s85_s20 = ssub.s32 %s425_s13, %s573_s17 }
   0xa   : > { %p288_p6 = scmp.ge.s32.totalorder %s429_s14, 1  ;;  %p88_p7 = scmp.eq.s32.totalorder %s85_s20, 0 }
   0xb   : > { %p494_p8 = por %p107_p5, %p106_p3  ;;  %p141_p9 = scmp.lt.s32.totalorder %s429_s14, 3 }
   0xc   : > { %s500_s22 = scalar_select %p88_p7, %s417_s11, %s90_s18  }
   0xd   : > { %p142_p10 = pnand %p288_p6, %p141_p9 }
   0xe   : > { %s165_s23 = sand.u32 (!%p142_p10), 1, %s413_s10   ;;  %p168_p11 = scmp.lt.s32.totalorder (!%p142_p10), %s421_s12, 1  ;;  %vm187_vm0 = vcmask (!%p142_p10), 261120  }
   0xf   : > { %145 = sbr.rel (%p142_p10) target bundleno = 45 (0x2d), region = 28  ;;  %s289_s24 = sshll.u32 (!%p142_p10), %s165_s23, 3 }
  0x10   : > { %s167_s26 = scalar_lea.vmem (!%p142_p10), [#allocation2], %s289_s24  ;;  %s293_s28 = sshll.u32 (!%p142_p10), %s421_s12, 7 }
  0x11   : > { %s204_s27 = sshll.u32 (!%p142_p10), %s167_s26, 4  ;;  %s190_s16 = scalar_lea.sflag (!%p142_p10), [#allocation3], %s165_s23  ;;  %s512_s27 = int_to_ptr.vmem [resolvable:$true] %s204_s27 }
  0x12   : > { %s351_s18 = scalar_lea.vmem (!%p142_p10), %s512_s27, 128  ;;  %s431_s20 = smov (!%p142_p10), [#allocation2]  }
  0x13   : > { %p352_p12 = scmp.ne.s32.totalorder (!%p142_p10), %s512_s27, %s351_s18  ;;  %s355_s24 = sshll.u32 (!%p142_p10), %s431_s20, 4  ;;  %s356_s24 = int_to_ptr.vmem [resolvable:$false] %s355_s24 }
  0x14   : > { %p358_p1 = scmp.lt.s32.totalorder (!%p142_p10), %s512_s27, %s356_s24 }
  0x15   : > { %p353_p13 = pnand (!%p142_p10), %p352_p12, %p487_p4 }
  0x16   : > { %s169_s25 = scalar_select %p168_p11, %s421_s12, 1 }
  0x17   : > { %s517_s12 = scalar_lea.hbm %s564_s2, %s293_s28  ;;  %p354_p0 = pneg %p353_p13 }
  0x18   : > { %s290_s29 = sshll.u32 %s169_s25, 3  ;;  %s177_s4 = scalar_lea.vmem %s563_s1, %s169_s25 }
  0x19   : > { %s174_s7 = scalar_lea.vmem %s562_s0, %s290_s29  ;;  %v291_v0 = vld [vmem:[%s177_s4] ss:$0 sm:$0xff]  ;;  %s357_s25 = scalar_lea.vmem %s356_s24, 256 }
  0x1a   : > { %v178_v1 = vld [vmem:[%s174_s7] sm:$0xff]  ;;  %p359_p2 = scmp.lt.s32.totalorder %s357_s25, %s351_s18 }
  0x1b   : > { %v186_v2 = vmul.f32 %v291_v0, %v178_v1 }
  0x1c   : > { %p360_p3 = por %p359_p2, %p358_p1 }
  0x1d   : > { %188 = vst.msk [vmem:[%s167_s26] sm:$0xff] %vm187_vm0, %v186_v2 }
  0x1e   : > { %p361_p5 = pnand %p360_p3, %p354_p0 }
  0x20   : > { %364 = shalt.err (!%p361_p5)
}
  0x21   : > { %s365_s23 = scalar_lea.hbm %s517_s12, 128  ;;  %s369_s29 = scalar_lea.hbm %s564_s2, 256 }
  0x22   : > { %p366_p6 = scmp.ne.s32.totalorder %s517_s12, %s365_s23  ;;  %p370_p10 = scmp.lt.u32.totalorder %s517_s12, %s564_s2 }
  0x23   : > { %p371_p11 = scmp.lt.u32.totalorder %s369_s29, %s365_s23  ;;  %p373_p13 = scmp.lt.u32.totalorder %s365_s23, %s517_s12 }
  0x24   : > { %p367_p7 = pnand %p366_p6, %p487_p4 }
  0x25   : > { %p372_p12 = por %p371_p11, %p370_p10 }
  0x26   : > { %p368_p9 = pneg %p367_p7 }
  0x27   : > { %p374_p0 = por %p373_p13, %p372_p12 }
  0x29   : > { %p375_p1 = pnand %p374_p0, %p368_p9 }
  0x2b   : > { %378 = shalt.err (!%p375_p1)
}
  0x2c   : > { %296 = dma.vmem_to_hbm [thread:$0]  (%p487_p4), %s512_s27, 128, %s517_s12, %s190_s16  }
  0x2d PF: > { %p302_p2 = scmp.ge.s32.totalorder %s429_s14, 2  ;;  %s216_s4 = sand.u32 1, %s409_s9  }
  0x2e   : > { %s217_s5 = scalar_lea.sflag [#allocation3], %s216_s4 }
  0x2f   : > { %p299_p3 = pnand %p302_p2, %p494_p8 }
  0x31   : > { %404 = dma.done.wait (!%p299_p3), %s217_s5, 128  }
  0x32   : > { %406 = vsyncadd (!%p299_p3), %s217_s5, 4294967168  ;;  %s15_s14 = sadd.s32 1, %s429_s14   ;;  %s567_s9 = smov %s413_s10 }
  0x33   : > { %p12_p5 = scmp.ge.s32.totalorder %s15_s14, 4   ;;  %s568_s10 = smov %s417_s11 }
  0x34   : > { %s569_s11 = smov %s500_s22  ;;  %s570_s12 = smov %s425_s13 }
  0x35   : > { %s571_s13 = smov %s573_s17  ;;  %14 = sbr.rel (!%p12_p5) target bundleno = 4 (0x4), region = 66 }
  0x3c   :  { %222 = vsyncpa [#allocation3], 1 }
  0x3d   :  { %224 = vsyncpa [#allocation3 + $0x1], 1 }

// kernel: spectral_gating.2
= control target key start
LH: loop header
LB: loop body
LE: loop exit
PB: predicated region body
PF: predicated region fallthrough
CT: control target
= control target key end

     0   :  { %12 = vsyncpa [#allocation4], 0  ;;  %s1108_s0 = inlined_call_operand.vmem [shape: f32[2,8,32], index: 0, kind: input, shape index: {}]   ;;  %s1109_s1 = inlined_call_operand.hbm [shape: f32[1,32], index: 1, kind: input, shape index: {}]   ;;  %s1110_s2 = inlined_call_operand.vmem [shape: f32[1,32], index: 2, kind: input, shape index: {}]   ;;  %s1111_s3 = inlined_call_operand.hbm [shape: f32[32,32], index: 3, kind: input, shape index: {}]   ;;  %s1112_s4 = inlined_call_operand.vmem [shape: f32[1,32], index: 4, kind: input, shape index: {}]   ;;  %s1113_s5 = inlined_call_operand.hbm [shape: f32[32,32], index: 5, kind: input, shape index: {}]   ;;  %s1114_s6 = inlined_call_operand.vmem [shape: f32[1,32], index: 6, kind: input, shape index: {}]   ;;  %s1115_s7 = inlined_call_operand.vmem [shape: f32[2,1,32], index: 7, kind: output, shape index: {}]  }
   0x1   :  { %13 = vsyncpa [#allocation6], 0  ;;  %s945_s24 = smov 0   ;;  %s947_s25 = smov 0  }
   0x2   :  { %s949_s26 = smov 0  }
   0x3 LB: > { %s897_s27 = smov [#allocation5]   ;;  %s650_s29 = sadd.s32 4294967295, %s895_s26   ;;  %s895_s26 = sphi %s949_s26, %s19_s26   ;;  %s891_s25 = sphi %s947_s25, %s1127_s25   ;;  %s887_s24 = sphi %s945_s24, %s1126_s24  }
   0x4   : > { %s242_s28 = sshll.u32 %s897_s27, 4  ;;  %p652_p0 = scmp.ge.s32.totalorder %s895_s26, 1  ;;  %s967_s28 = int_to_ptr.vmem [resolvable:$true] %s242_s28 }
   0x5   : > { %p216_p1 = scmp.lt.s32.totalorder %s895_s26, 3  ;;  %p963_p2 = scmp.eq.s32.totalorder %s650_s29, 0 }
   0x6   : > { %s31_s10 = sadd.s32 1, %s891_s25  ;;  %s898_s12 = smov [#allocation3]  }
   0x7   : > { %s1119_s30 = scalar_select %p963_p2, 1, 0 }
   0x8   : > { %p969_p3 = pnand %p652_p0, %p216_p1  ;;  %p982_p6 = scmp.ge.s32.totalorder %s31_s10, 2 }
   0x9   : > { %s229_s13 = sshll.u32 %s898_s12, 4  ;;  %s781_s16 = scalar_lea.hbm %s1111_s3, 512  ;;  %s230_s13 = int_to_ptr.vmem [resolvable:$true] %s229_s13 }
   0xa   : > { %s1120_s8 = scalar_select %p969_p3, 1, 0 }
   0xb   : > { %p725_p4 = pneg %p969_p3  ;;  %p782_p7 = scmp.ne.s32.totalorder %s1111_s3, %s781_s16 }
   0xc   : > { %p788_p11 = scmp.lt.u32.totalorder %s781_s16, %s1111_s3 }
   0xd   : > { %p977_p5 = pnand %p963_p2, %p725_p4 }
   0xf   : > { %p994_p8 = pneg %p977_p5 }
  0x11   : > { %p784_p9 = pnand %p994_p8, %p782_p7 }
  0x13   : > { %p785_p10 = pneg %p784_p9 }
  0x15   : > { %p790_p12 = pnand %p788_p11, %p785_p10 }
  0x17   : > { %793 = shalt.err (!%p790_p12)
}
  0x18   : > { %s794_s22 = scalar_lea.vmem %s967_s28, 512  ;;  %p802_p4 = scmp.lt.s32.totalorder %s967_s28, %s967_s28 }
  0x19   : > { %p795_p13 = scmp.ne.s32.totalorder %s967_s28, %s794_s22  ;;  %p803_p2 = scmp.lt.s32.totalorder %s794_s22, %s794_s22 }
  0x1b   : > { %p797_p0 = pnand %p795_p13, %p994_p8  ;;  %p804_p7 = por %p803_p2, %p802_p4 }
  0x1d   : > { %p798_p1 = pneg %p797_p0 }
  0x1f   : > { %p805_p9 = pnand %p804_p7, %p798_p1 }
  0x21   : > { %808 = shalt.err (!%p805_p9)
}
  0x22   : > { %s899_s23 = smov 128   ;;  %s900_s27 = smov 8  }
  0x23   : > { %731 = dma.hbm_to_vmem [thread:$0]  (!%p977_p5), %s1111_s3, 512, %s967_s28, [#allocation6], %s899_s23, %s899_s23, %s900_s27  }
  0x24   : > { %s1129_s10 = smov (%p982_p6, %s31_s10), 0  ;;  %s809_s16 = scalar_lea.hbm %s1109_s1, 16 }
  0x25   : > { %p810_p2 = scmp.ne.s32.totalorder %s1109_s1, %s809_s16  ;;  %p816_p12 = scmp.lt.u32.totalorder %s809_s16, %s1109_s1 }
  0x27   : > { %p812_p10 = pnand %p810_p2, %p994_p8 }
  0x29   : > { %p813_p11 = pneg %p812_p10 }
  0x2b   : > { %p818_p13 = pnand %p816_p12, %p813_p11 }
  0x2d   : > { %821 = shalt.err (!%p818_p13)
}
  0x2e   : > { %s822_s28 = scalar_lea.vmem %s230_s13, 16  ;;  %s829_s11 = scalar_lea.vmem %s230_s13, 32 }
  0x2f   : > { %p823_p6 = scmp.ne.s32.totalorder %s230_s13, %s822_s28  ;;  %p830_p4 = scmp.lt.s32.totalorder %s230_s13, %s230_s13 }
  0x30   : > { %p831_p7 = scmp.lt.s32.totalorder %s829_s11, %s822_s28 }
  0x31   : > { %p825_p0 = pnand %p823_p6, %p994_p8 }
  0x32   : > { %p832_p9 = por %p831_p7, %p830_p4 }
  0x33   : > { %p826_p1 = pneg %p825_p0 }
  0x35   : > { %p833_p3 = pnand %p832_p9, %p826_p1 }
  0x37   : > { %836 = shalt.err (!%p833_p3)
}
  0x38   : > { %728 = dma.hbm_to_vmem [thread:$0]  (!%p977_p5), %s1109_s1, 16, %s230_s13, [#allocation4]  }
  0x39   : > { %s901_s12 = smov [#allocation7]   ;;  %s837_s17 = scalar_lea.hbm %s1113_s5, 512 }
  0x3a   : > { %s258_s14 = sshll.u32 %s901_s12, 4  ;;  %p838_p2 = scmp.ne.s32.totalorder %s1113_s5, %s837_s17  ;;  %s259_s14 = int_to_ptr.vmem [resolvable:$true] %s258_s14 }
  0x3b   : > { %p844_p11 = scmp.lt.u32.totalorder %s837_s17, %s1113_s5 }
  0x3c   : > { %p840_p3 = pnand %p838_p2, %p994_p8 }
  0x3e   : > { %p841_p10 = pneg %p840_p3 }
  0x40   : > { %p846_p12 = pnand %p844_p11, %p841_p10 }
  0x42   : > { %849 = shalt.err (!%p846_p12)
}
  0x43   : > { %s850_s13 = scalar_lea.vmem %s259_s14, 512  ;;  %p858_p1 = scmp.lt.s32.totalorder %s259_s14, %s259_s14 }
  0x44   : > { %p851_p13 = scmp.ne.s32.totalorder %s259_s14, %s850_s13  ;;  %p859_p4 = scmp.lt.s32.totalorder %s850_s13, %s850_s13 }
  0x46   : > { %p853_p6 = pnand %p851_p13, %p994_p8  ;;  %p860_p7 = por %p859_p4, %p858_p1 }
  0x48   : > { %p854_p0 = pneg %p853_p6 }
  0x4a   : > { %p861_p9 = pnand %p860_p7, %p854_p0 }
  0x4c   : > { %864 = shalt.err (!%p861_p9)
}
  0x4d   : > { %734 = dma.hbm_to_vmem [thread:$0]  (!%p977_p5), %s1113_s5, 512, %s259_s14, [#allocation6], %s899_s23, %s899_s23, %s900_s27  }
  0x4e   : > { %p1124_p2 = scmp.ne.s32.totalorder %s1120_s8, 0 }
  0x4f   : > { %p1125_p8 = scmp.ne.s32.totalorder (!%p1124_p2), %s1119_s30, 0 }
  0x50   : > { %287 = sbr.rel (%p1124_p2) target bundleno = 906 (0x38a), region = 48 }
  0x57   : > { %878 = dma.done.wait (%p1125_p8), [#allocation4], 16  }
  0x58   : > { %880 = vsyncadd (%p1125_p8), [#allocation4], 4294967280 }
  0x59   : > { %882 = dma.done.wait (%p1125_p8), [#allocation6], 1024  }
  0x5a   : > { %884 = vsyncadd (%p1125_p8), [#allocation6], 4294966272  ;;  %p327_p3 = scmp.lt.s32.totalorder %s887_s24, 1  ;;  %vm341_vm0 = vcmask 261120   ;;  %v902_v7 = vmov 0.0   ;;  %v391_v8 = vld [vmem:[#allocation5] sm:$0xff] }
  0x5b   : > { %342 = vst.msk [vmem:[#allocation2] sm:$0xff] %vm341_vm0, %v902_v7  ;;  %v392_v9 = vld [vmem:[#allocation5 + $0x8] sm:$0xff]  ;;  %v393_v10 = vld [vmem:[#allocation5 + $0x10] sm:$0xff]  ;;  %v903_v11 = vmov 0.0|0.0   ;;  %v394_v13 = vld [vmem:[#allocation5 + $0x18] sm:$0xff]  ;;  %vm904_vm1 = vmmov 0  }
  0x5c   : > { %s1131_s24 = smov (!%p327_p3, %s887_s24), 1  ;;  %701 = vmatprep.subr.bf16.mxu0 %v903_v11  ;;  %v702_v12 = vpack.c.bf16 %v392_v9, %v391_v8  ;;  %707 = vmatprep.subr.bf16.mxu1 %v903_v11  ;;  %v705_v14 = vpack.c.bf16 %v394_v13, %v393_v10  ;;  %v662_v19 = vld [vmem:[#allocation3] ss:$0 sm:$0xff]  ;;  %v663_v21 = vld [vmem:[%s1110_s2] ss:$0 sm:$0xff]  ;;  %v475_v36 = vld [vmem:[#allocation7 + $0x8] sm:$0xff] }
  0x5d   : > { %s661_s8 = sshll.u32 %s1131_s24, 3  ;;  %687 = vmatprep.mubr.msk.f32.mxu0 %vm904_vm1, %v902_v7  ;;  %698 = vmatprep.mubr.msk.f32.mxu1 %vm904_vm1, %v902_v7  ;;  %v474_v35 = vld [vmem:[#allocation7] sm:$0xff]  ;;  %v476_v38 = vld [vmem:[#allocation7 + $0x10] sm:$0xff]  ;;  %v477_v39 = vld [vmem:[#allocation7 + $0x18] sm:$0xff]  ;;  %s336_s18 = scalar_lea.vmem %s1115_s7, %s1131_s24  ;;  %vm558_vm2 = vcmask 253952  }
  0x5e   : > { %s333_s23 = scalar_lea.vmem %s1108_s0, %s661_s8  ;;  %703 = vmatpush3.bf16.msra.mxu0 %v702_v12  ;;  %v708_v37 = vpack.c.bf16 %v475_v36, %v474_v35  ;;  %v711_v40 = vpack.c.bf16 %v477_v39, %v476_v38  ;;  %v395_v41 = vld [vmem:[%s1112_s4] sm:$0x1] }
  0x5f   : > { %v343_v0 = vld [vmem:[%s333_s23] sm:$0xff]  ;;  %704 = vmatprep.subr.bf16.mxu0 %v903_v11 }
  0x60   : > { %v345_v1 = vsel %vm341_vm0, %v343_v0, 0.0  ;;  %709 = vmatpush3.bf16.msra.mxu1 %v708_v37  ;;  %v478_v50 = vld [vmem:[%s1114_s6] sm:$0x1] }
  0x61   : > { %346 = vadd.xlane.f32.xlu0 %v345_v1  ;;  %710 = vmatprep.subr.bf16.mxu1 %v903_v11 }
  0x62   : > { %706 = vmatpush3.bf16.msra.mxu0 %v705_v14  ;;  %v375_v23 = vld [vmem:[#allocation2] sm:$0xff] }
  0x64   : > { %712 = vmatpush3.bf16.msra.mxu1 %v711_v40 }
  0xee   : > { %v347_v2 = vpop.xlane.xlu0 %346 }
  0xef   : > { %v349_v3 = vmul.f32 0.03125, %v347_v2 }
  0xf1   : > { %v350_v4 = vsub.f32 %v343_v0, %v349_v3 }
  0xf3   : > { %v351_v5 = vmul.f32 %v350_v4, %v350_v4 }
  0xf5   : > { %v352_v6 = vsel %vm341_vm0, %v351_v5, 0.0 }
  0xf6   : > { %353 = vadd.xlane.f32.xlu0 %v352_v6 }
 0x183   : > { %v354_v15 = vpop.xlane.xlu0 %353 }
 0x184   : > { %v355_v16 = vmul.f32 0.03125, %v354_v15 }
 0x186   : > { %v356_v17 = vadd.f32 1e-05, %v355_v16 }
 0x188   : > { %773 = vrsqrt.f32 %v356_v17 }
 0x192   : > { %v774_v18 = vpop.eup %773 }
 0x193   : > { %v358_v20 = vmul.f32 %v774_v18, %v350_v4 }
 0x195   : > { %v366_v22 = vmul.f32 %v662_v19, %v358_v20 }
 0x197   : > { %v374_v24 = vadd.f32 %v663_v21, %v366_v22 }
 0x199   : > { %v377_v25 = vadd.f32 %v375_v23, %v374_v24 }
 0x19b   : > { %378 = vst.msk [vmem:[#allocation2] sm:$0xff] %vm341_vm0, %v377_v25 }
 0x1a2   : > { %v382_v26 = vld [vmem:[#allocation2] sm:$0xff] }
 0x1a3   : > { %v383_v27 = vsel %vm341_vm0, %v382_v26, 0.0 }
 0x1a4   : > { %v384_v28 = vrot.slane %v383_v27, 4 }
 0x1a6   : > { %v385_v29 = vadd.f32 %v384_v28, %v383_v27 }
 0x1a8   : > { %v386_v30 = vrot.slane %v385_v29, 2 }
 0x1aa   : > { %v387_v31 = vadd.f32 %v386_v30, %v385_v29 }
 0x1ac   : > { %v388_v32 = vrot.slane %v387_v31, 1 }
 0x1ae   : > { %v389_v33 = vadd.f32 %v388_v32, %v387_v31 }
 0x1b0   : > { %v390_v34 = vmul.f32 0.125, %v389_v33 }
 0x1b2   : > { %688 = vmatmul.mubr.msk.f32.vlgmr.msra.gmra.mrb[0].mxu0 %vm341_vm0, %v390_v34 }
 0x285   : > { %v465_v42 = vpop.f32.mrb[0].mxu0 }
 0x286   : > { %v466_v43 = vadd.f32 %v465_v42, %v395_v41  ;;  %v689_v44 = vpop.f32.mrb[1].mxu0 }
 0x288   : > { %v470_v45 = vmul.f32 0.70710677, %v466_v43  ;;  %v469_v47 = vmul.f32 0.5, %v466_v43 }
 0x28a   : > { %775 = verf.f32 %v470_v45 }
 0x294   : > { %v776_v46 = vpop.eup %775 }
 0x295   : > { %v472_v48 = vadd.f32 1.0, %v776_v46 }
 0x297   : > { %v473_v49 = vmul.f32 %v472_v48, %v469_v47 }
 0x299   : > { %699 = vmatmul.mubr.msk.f32.vlgmr.msra.gmra.mrb[0].mxu1 %vm341_vm0, %v473_v49 }
 0x36c   : > { %v548_v51 = vpop.f32.mrb[0].mxu1 }
 0x36d   : > { %v549_v52 = vadd.f32 %v548_v51, %v478_v50  ;;  %v700_v53 = vpop.f32.mrb[1].mxu1 }
 0x36f   : > { %v666_v54 = vmul.f32 -1.442695, %v549_v52 }
 0x371   : > { %777 = vpow2.f32 %v666_v54 }
 0x37b   : > { %v778_v55 = vpop.eup %777 }
 0x37c   : > { %v555_v56 = vadd.f32 1.0, %v778_v55 }
 0x37e   : > { %779 = vrcp.f32 %v555_v56 }
 0x388   : > { %v780_v57 = vpop.eup %779 }
 0x389   : > { %559 = vst.msk [vmem:[%s336_s18] sm:$0x1] %vm558_vm2, %v780_v57 }
 0x38a PF: > { %s19_s26 = sadd.s32 1, %s895_s26   ;;  %s1126_s24 = smov %s891_s25 }
 0x38b   : > { %p16_p5 = scmp.ge.s32.totalorder %s19_s26, 4   ;;  %s1127_s25 = smov %s1129_s10 }
 0x38d   :  { %18 = sbr.rel (!%p16_p5) target bundleno = 3 (0x3), region = 99 }
 0x394   :  { %577 = vsyncpa [#allocation4], 1 }
 0x395   :  { %579 = vsyncpa [#allocation4 + $0x1], 1 }
 0x396   :  { %580 = vsyncpa [#allocation6], 1 }

</bundles_post_ra>
